<compile_context>
chip_gen: v7x
topology: tpu7x:2x2x1
jax: 0.10.0
libtpu: 0.0.40
codegen_flags: <defaults>
</compile_context>

<pallas_src>
import functools
import math

import jax
import jax.numpy as jnp
from jax.experimental import pallas as pl
from jax.experimental.pallas import tpu as pltpu

_VMEM_LIMIT = 48 * 1024 * 1024  # below v7x's 64 MiB physical, above default scoped


# ----------------------------------------------------------------------------
# Linear projection kernel (wq / wkv / wo): y = x @ W_t   (W_t already [K, N])
# K-tiled with f32 VMEM accumulator.
# ----------------------------------------------------------------------------
def _matmul_kernel(x_ref, w_ref, o_ref, acc_ref, *, mxu_dtype):
    @pl.when(pl.program_id(2) == 0)
    def _():
        acc_ref[...] = jnp.zeros_like(acc_ref)

    acc_ref[...] += jnp.dot(
        x_ref[...].astype(mxu_dtype),
        w_ref[...].astype(mxu_dtype),
        preferred_element_type=jnp.float32,
    )

    @pl.when(pl.program_id(2) == pl.num_programs(2) - 1)
    def _():
        o_ref[...] = acc_ref[...].astype(o_ref.dtype)


def _pick_tile(dim, pref):
    if dim <= pref:
        return dim                 # full-dim block (always legal)
    if dim % pref == 0:
        return pref
    return dim                     # TODO(synk): pad ragged dims for production shapes


def linear(x2d, w_t, *, mxu_dtype=None):
    """x2d: [M, K], w_t: [K, N] -> [M, N]  (no bias, matching bias=False)."""
    M, K = x2d.shape
    Kw, N = w_t.shape
    assert K == Kw
    if mxu_dtype is None:
        mxu_dtype = x2d.dtype

    tm = _pick_tile(M, 256)
    tn = _pick_tile(N, 256)        # 256-wide N fills the 2x256x256 MXU on v6e/v7x
    tk = _pick_tile(K, 512)
    grid = (M // tm, N // tn, K // tk)

    kernel = functools.partial(_matmul_kernel, mxu_dtype=mxu_dtype)
    return pl.pallas_call(
        kernel,
        out_shape=jax.ShapeDtypeStruct((M, N), x2d.dtype),
        grid_spec=pltpu.PrefetchScalarGridSpec(
            num_scalar_prefetch=0,
            grid=grid,
            in_specs=[
                pl.BlockSpec((tm, tk), lambda i, j, k: (i, k)),
                pl.BlockSpec((tk, tn), lambda i, j, k: (k, j)),
            ],
            out_specs=pl.BlockSpec((tm, tn), lambda i, j, k: (i, j)),
            scratch_shapes=[pltpu.VMEM((tm, tn), jnp.float32)],
        ),
        compiler_params=pltpu.CompilerParams(
            dimension_semantics=("parallel", "parallel", "arbitrary"),
            vmem_limit_bytes=_VMEM_LIMIT,
        ),
    )(x2d, w_t)


# ----------------------------------------------------------------------------
# Fused RMSNorm(q) / RMSNorm(k) + scaled-dot-product-attention kernel.
# One grid step == one (batch, Sq-tile); ALL heads processed per step.
# Consumes the flat projection outputs directly:
#   q_ref  : [tq,  H*D]           (wq output,  'b s (h d)')
#   kv_ref : [Skv, H*2*D]         (wkv output, per head [k(D), v(D)])
# Produces a lane-dense flat output o_ref : [tq, H*D].
# ----------------------------------------------------------------------------
def _attn_kernel(q_ref, kv_ref, qw_ref, kw_ref, o_ref, *,
                 n_heads, head_dim, eps, scale, mxu_dtype):
    in_dtype = q_ref.dtype
    D = head_dim
    qw = qw_ref[...]                     # [1, D]
    kw = kw_ref[...]                     # [1, D]

    outs = []
    for h in range(n_heads):             # static unroll (n_heads is small)
        q = q_ref[:, h * D:(h + 1) * D].astype(jnp.float32)            # [tq, D]
        k = kv_ref[:, h * 2 * D: h * 2 * D + D].astype(jnp.float32)    # [Skv, D]
        v = kv_ref[:, h * 2 * D + D: (h + 1) * 2 * D]                  # [Skv, D]

        # RMSNorm: normalize in f32, cast back (type_as), then affine weight.
        q = q * jax.lax.rsqrt(jnp.mean(q * q, axis=-1, keepdims=True) + eps)
        q = q.astype(in_dtype) * qw
        k = k * jax.lax.rsqrt(jnp.mean(k * k, axis=-1, keepdims=True) + eps)
        k = k.astype(in_dtype) * kw

        # scores = q . k^T  (contract last dims; no materialized transpose)
        s = jax.lax.dot_general(
            q.astype(mxu_dtype), k.astype(mxu_dtype),
            dimension_numbers=(((1,), (1,)), ((), ())),
            preferred_element_type=jnp.float32,
        ) * scale                                                       # [tq, Skv]

        # softmax (f32) + PV matmul; divide replaced by EUP reciprocal
        m = jnp.max(s, axis=-1, keepdims=True)
        p = jnp.exp(s - m)
        denom = jnp.sum(p, axis=-1, keepdims=True)
        o = jnp.dot(p.astype(mxu_dtype), v.astype(mxu_dtype),
                    preferred_element_type=jnp.float32)                 # [tq, D]
        o = o * pl.reciprocal(denom, approx=True)
        outs.append(o)

    # Single lane-dense store: [tq, n_heads*head_dim] (multiple of 128 lanes).
    o_ref[...] = jnp.concatenate(outs, axis=-1).astype(o_ref.dtype)


def attention(xq, xkv, q_norm_w, k_norm_w, n_heads, head_dim, *,
              eps=1e-6, mxu_dtype=None):
    """xq: [B, Sq, H*D], xkv: [B, Skv, H*2*D] -> [B, Sq, H*D] (flat, head-major)."""
    B, Sq, HD = xq.shape
    Skv = xkv.shape[1]
    assert HD == n_heads * head_dim
    if mxu_dtype is None:
        mxu_dtype = xq.dtype

    # Tile Sq so the (Sq, Skv) scores + q/o tiles stay bounded in VMEM and the
    # grid has a parallel axis to shard across v7x's two TensorCores.
    tq = _pick_tile(Sq, 512)

    kernel = functools.partial(
        _attn_kernel, n_heads=n_heads, head_dim=head_dim, eps=eps,
        scale=1.0 / math.sqrt(head_dim), mxu_dtype=mxu_dtype,
    )
    return pl.pallas_call(
        kernel,
        out_shape=jax.ShapeDtypeStruct((B, Sq, HD), xq.dtype),
        grid_spec=pltpu.PrefetchScalarGridSpec(
            num_scalar_prefetch=0,
            grid=(B, Sq // tq),
            in_specs=[
                # leading batch dim squeezed out -> kernel refs are 2-D
                pl.BlockSpec((None, tq, HD), lambda b, i: (b, i, 0)),
                # K/V block index constant across the Sq axis -> stays resident
                pl.BlockSpec((None, Skv, 2 * HD), lambda b, i: (b, 0, 0)),
                pl.BlockSpec((1, head_dim), lambda b, i: (0, 0)),
                pl.BlockSpec((1, head_dim), lambda b, i: (0, 0)),
            ],
            out_specs=pl.BlockSpec((None, tq, HD), lambda b, i: (b, i, 0)),
        ),
        compiler_params=pltpu.CompilerParams(
            dimension_semantics=("parallel", "parallel"),
            vmem_limit_bytes=_VMEM_LIMIT,
        ),
    )(xq, xkv, q_norm_w.reshape(1, head_dim), k_norm_w.reshape(1, head_dim))


# ----------------------------------------------------------------------------
# CrossAttention forward (no transposes between pallas_calls)
# ----------------------------------------------------------------------------
def cross_attention_forward(x, enc, params, n_heads, head_dim):
    B, Sq, Hd = x.shape
    Skv = enc.shape[1]

    xq = linear(x.reshape(B * Sq, Hd), params["wq_t"]).reshape(B, Sq, Hd)
    xkv = linear(enc.reshape(B * Skv, Hd), params["wkv_t"]).reshape(B, Skv, 2 * Hd)

    o = attention(xq, xkv, params["q_norm_w"], params["k_norm_w"],
                  n_heads, head_dim)                       # [B, Sq, Hd] flat

    return linear(o.reshape(B * Sq, Hd), params["wo_t"]).reshape(B, Sq, Hd)


# ----------------------------------------------------------------------------
# Pure-JAX reference (mirrors the PyTorch module) for correctness check
# ----------------------------------------------------------------------------
def reference_forward(x, enc, params, n_heads, head_dim, eps=1e-6):
    B, Sq, Hd = x.shape
    Skv = enc.shape[1]
    xq = (x @ params["wq"].T).reshape(B, Sq, n_heads, head_dim)
    xkv = (enc @ params["wkv"].T).reshape(B, Skv, n_heads, 2 * head_dim)
    xk, xv = xkv[..., :head_dim], xkv[..., head_dim:]

    def rms(a, w):
        a32 = a.astype(jnp.float32)
        a32 = a32 * jax.lax.rsqrt(jnp.mean(a32 * a32, axis=-1, keepdims=True) + eps)
        return a32.astype(a.dtype) * w

    xq = rms(xq, params["q_norm_w"])
    xk = rms(xk, params["k_norm_w"])

    q = jnp.transpose(xq, (0, 2, 1, 3)).astype(jnp.float32)
    k = jnp.transpose(xk, (0, 2, 1, 3)).astype(jnp.float32)
    v = jnp.transpose(xv, (0, 2, 1, 3)).astype(jnp.float32)
    s = jnp.einsum("bhqd,bhkd->bhqk", q, k) / math.sqrt(head_dim)
    p = jax.nn.softmax(s, axis=-1)
    o = jnp.einsum("bhqk,bhkd->bhqd", p, v)
    o = jnp.transpose(o, (0, 2, 1, 3)).reshape(B, Sq, Hd).astype(x.dtype)
    return o @ params["wo"].T


if __name__ == "__main__":
    hidden_dim = 128
    head_dim = 64
    n_heads = hidden_dim // head_dim
    B, Sq, Skv = 2, 16, 8

    key = jax.random.PRNGKey(0)
    kx, ke, kq, kkv, ko, kqn, kkn = jax.random.split(key, 7)

    x = jax.random.normal(kx, (B, Sq, hidden_dim), dtype=jnp.float32)
    enc = jax.random.normal(ke, (B, Skv, hidden_dim), dtype=jnp.float32)

    # nn.Linear weights are [out_features, in_features]; transpose ONCE here
    # (parameter-load time), not per forward.
    wq = 0.02 * jax.random.normal(kq, (hidden_dim, hidden_dim), jnp.float32)
    wkv = 0.02 * jax.random.normal(kkv, (2 * hidden_dim, hidden_dim), jnp.float32)
    wo = 0.02 * jax.random.normal(ko, (hidden_dim, hidden_dim), jnp.float32)
    q_norm_w = 1.0 + 0.1 * jax.random.normal(kqn, (head_dim,), jnp.float32)
    k_norm_w = 1.0 + 0.1 * jax.random.normal(kkn, (head_dim,), jnp.float32)

    params = {
        "wq_t": wq.T, "wkv_t": wkv.T, "wo_t": wo.T,
        "q_norm_w": q_norm_w, "k_norm_w": k_norm_w,
    }

    fwd = jax.jit(lambda x_, e_, p_: cross_attention_forward(
        x_, e_, p_, n_heads, head_dim))
    out = jax.block_until_ready(fwd(x, enc, params))

    ref = reference_forward(
        x, enc,
        {"wq": wq, "wkv": wkv, "wo": wo,
         "q_norm_w": q_norm_w, "k_norm_w": k_norm_w},
        n_heads, head_dim,
    )

    assert out.shape == (B, Sq, hidden_dim)
    # Tolerance accounts for pl.reciprocal(approx=True) in the softmax denom.
    max_err = float(jnp.max(jnp.abs(out - ref)))
    assert jnp.allclose(out, ref, atol=2e-3, rtol=2e-3), max_err
    print("KERNEL_OK")
</pallas_src>

<mosaic_0001>
module attributes {stable_mosaic.version = 11 : i64} {
  func.func @_matmul_kernel(%arg0: i32, %arg1: i32, %arg2: i32, %arg3: memref<32x128xf32, #tpu.memory_space<vmem>>, %arg4: memref<128x128xf32, #tpu.memory_space<vmem>>, %arg5: memref<32x128xf32, #tpu.memory_space<vmem>>, %arg6: memref<32x128xf32, #tpu.memory_space<vmem>>) attributes {dimension_semantics = [#tpu.dimension_semantics<parallel>, #tpu.dimension_semantics<parallel>, #tpu.dimension_semantics<arbitrary>], iteration_bounds = array<i64: 1, 1, 1>, scalar_prefetch = 0 : i64, scratch_operands = 1 : i64, tpu.core_type = #tpu.core_type<tc>, window_params = [{transform_indices = @transform_0, window_bounds = array<i64: 32, 128>}, {transform_indices = @transform_1, window_bounds = array<i64: 128, 128>}, {transform_indices = @transform_2, window_bounds = array<i64: 32, 128>}]} {
    %c0_i32 = arith.constant 0 : i32
    %0 = arith.cmpi eq, %arg2, %c0_i32 : i32
    %1 = arith.extui %0 : i1 to i32
    %c0_i32_0 = arith.constant 0 : i32
    %2 = arith.cmpi ne, %1, %c0_i32_0 : i32
    scf.if %2 {
      %cst_10 = arith.constant 0.000000e+00 : f32
      %12 = vector.broadcast %cst_10 : f32 to vector<32x128xf32>
      %c0_11 = arith.constant 0 : index
      %c0_12 = arith.constant 0 : index
      %13 = vector.load %arg6[%c0_11, %c0_12] : memref<32x128xf32, #tpu.memory_space<vmem>>, vector<32x128xf32>
      tpu.vector_store %arg6[%c0_11, %c0_12], %12 {strides = array<i32>} : memref<32x128xf32, #tpu.memory_space<vmem>>, vector<32x128xf32>,
    } else {
    }
    %c0 = arith.constant 0 : index
    %c0_1 = arith.constant 0 : index
    %3 = vector.load %arg6[%c0, %c0_1] : memref<32x128xf32, #tpu.memory_space<vmem>>, vector<32x128xf32>
    %c0_2 = arith.constant 0 : index
    %c0_3 = arith.constant 0 : index
    %4 = vector.load %arg3[%c0_2, %c0_3] : memref<32x128xf32, #tpu.memory_space<vmem>>, vector<32x128xf32>
    %c0_4 = arith.constant 0 : index
    %c0_5 = arith.constant 0 : index
    %5 = vector.load %arg4[%c0_4, %c0_5] : memref<128x128xf32, #tpu.memory_space<vmem>>, vector<128x128xf32>
    %cst = arith.constant dense<0.000000e+00> : vector<32x128xf32>
    %6 = tpu.matmul %4, %5, %cst {dimension_numbers = #tpu.dot_dimension_numbers<[1], [0], [0], [1], [0, 0, 1, 1], [], []>} : vector<32x128xf32>, vector<128x128xf32>, vector<32x128xf32> -> vector<32x128xf32>
    %7 = arith.addf %3, %6 : vector<32x128xf32>
    %c0_6 = arith.constant 0 : index
    %c0_7 = arith.constant 0 : index
    %8 = vector.load %arg6[%c0_6, %c0_7] : memref<32x128xf32, #tpu.memory_space<vmem>>, vector<32x128xf32>
    tpu.vector_store %arg6[%c0_6, %c0_7], %7 {strides = array<i32>} : memref<32x128xf32, #tpu.memory_space<vmem>>, vector<32x128xf32>,
    %c0_i32_8 = arith.constant 0 : i32
    %9 = arith.cmpi eq, %arg2, %c0_i32_8 : i32
    %10 = arith.extui %9 : i1 to i32
    %c0_i32_9 = arith.constant 0 : i32
    %11 = arith.cmpi ne, %10, %c0_i32_9 : i32
    scf.if %11 {
      %c0_10 = arith.constant 0 : index
      %c0_11 = arith.constant 0 : index
      %12 = vector.load %arg6[%c0_10, %c0_11] : memref<32x128xf32, #tpu.memory_space<vmem>>, vector<32x128xf32>
      %c0_12 = arith.constant 0 : index
      %c0_13 = arith.constant 0 : index
      %13 = vector.load %arg5[%c0_12, %c0_13] : memref<32x128xf32, #tpu.memory_space<vmem>>, vector<32x128xf32>
      tpu.vector_store %arg5[%c0_12, %c0_13], %12 {strides = array<i32>} : memref<32x128xf32, #tpu.memory_space<vmem>>, vector<32x128xf32>,
    } else {
    }
    return
  }
  func.func @transform_0(%arg0: i32, %arg1: i32, %arg2: i32) -> (i32, i32) {
    %c0_i32 = arith.constant 0 : i32
    return %arg0, %arg2 : i32, i32
  }
  func.func @transform_1(%arg0: i32, %arg1: i32, %arg2: i32) -> (i32, i32) {
    %c0_i32 = arith.constant 0 : i32
    return %arg2, %arg1 : i32, i32
  }
  func.func @transform_2(%arg0: i32, %arg1: i32, %arg2: i32) -> (i32, i32) {
    %c0_i32 = arith.constant 0 : i32
    return %arg0, %arg1 : i32, i32
  }
}

module attributes {stable_mosaic.version = 11 : i64} {
  func.func @_matmul_kernel(%arg0: i32, %arg1: i32, %arg2: i32, %arg3: memref<32x128xf32, #tpu.memory_space<vmem>>, %arg4: memref<128x128xf32, #tpu.memory_space<vmem>>, %arg5: memref<32x128xf32, #tpu.memory_space<vmem>>, %arg6: memref<32x128xf32, #tpu.memory_space<vmem>>) attributes {dimension_semantics = [#tpu.dimension_semantics<parallel>, #tpu.dimension_semantics<parallel>, #tpu.dimension_semantics<arbitrary>], iteration_bounds = array<i64: 1, 1, 1>, scalar_prefetch = 0 : i64, scratch_operands = 1 : i64, tpu.core_type = #tpu.core_type<tc>, window_params = [{transform_indices = @transform_0, window_bounds = array<i64: 32, 128>}, {transform_indices = @transform_1, window_bounds = array<i64: 128, 128>}, {transform_indices = @transform_2, window_bounds = array<i64: 32, 128>}]} {
    %c0_i32 = arith.constant 0 : i32
    %0 = arith.cmpi eq, %arg2, %c0_i32 : i32
    %1 = arith.extui %0 : i1 to i32
    %c0_i32_0 = arith.constant 0 : i32
    %2 = arith.cmpi ne, %1, %c0_i32_0 : i32
    scf.if %2 {
      %cst_10 = arith.constant 0.000000e+00 : f32
      %12 = vector.broadcast %cst_10 : f32 to vector<32x128xf32>
      %c0_11 = arith.constant 0 : index
      %c0_12 = arith.constant 0 : index
      %13 = vector.load %arg6[%c0_11, %c0_12] : memref<32x128xf32, #tpu.memory_space<vmem>>, vector<32x128xf32>
      tpu.vector_store %arg6[%c0_11, %c0_12], %12 {strides = array<i32>} : memref<32x128xf32, #tpu.memory_space<vmem>>, vector<32x128xf32>,
    } else {
    }
    %c0 = arith.constant 0 : index
    %c0_1 = arith.constant 0 : index
    %3 = vector.load %arg6[%c0, %c0_1] : memref<32x128xf32, #tpu.memory_space<vmem>>, vector<32x128xf32>
    %c0_2 = arith.constant 0 : index
    %c0_3 = arith.constant 0 : index
    %4 = vector.load %arg3[%c0_2, %c0_3] : memref<32x128xf32, #tpu.memory_space<vmem>>, vector<32x128xf32>
    %c0_4 = arith.constant 0 : index
    %c0_5 = arith.constant 0 : index
    %5 = vector.load %arg4[%c0_4, %c0_5] : memref<128x128xf32, #tpu.memory_space<vmem>>, vector<128x128xf32>
    %cst = arith.constant dense<0.000000e+00> : vector<32x128xf32>
    %6 = tpu.matmul %4, %5, %cst {dimension_numbers = #tpu.dot_dimension_numbers<[1], [0], [0], [1], [0, 0, 1, 1], [], []>} : vector<32x128xf32>, vector<128x128xf32>, vector<32x128xf32> -> vector<32x128xf32>
    %7 = arith.addf %3, %6 : vector<32x128xf32>
    %c0_6 = arith.constant 0 : index
    %c0_7 = arith.constant 0 : index
    %8 = vector.load %arg6[%c0_6, %c0_7] : memref<32x128xf32, #tpu.memory_space<vmem>>, vector<32x128xf32>
    tpu.vector_store %arg6[%c0_6, %c0_7], %7 {strides = array<i32>} : memref<32x128xf32, #tpu.memory_space<vmem>>, vector<32x128xf32>,
    %c0_i32_8 = arith.constant 0 : i32
    %9 = arith.cmpi eq, %arg2, %c0_i32_8 : i32
    %10 = arith.extui %9 : i1 to i32
    %c0_i32_9 = arith.constant 0 : i32
    %11 = arith.cmpi ne, %10, %c0_i32_9 : i32
    scf.if %11 {
      %c0_10 = arith.constant 0 : index
      %c0_11 = arith.constant 0 : index
      %12 = vector.load %arg6[%c0_10, %c0_11] : memref<32x128xf32, #tpu.memory_space<vmem>>, vector<32x128xf32>
      %c0_12 = arith.constant 0 : index
      %c0_13 = arith.constant 0 : index
      %13 = vector.load %arg5[%c0_12, %c0_13] : memref<32x128xf32, #tpu.memory_space<vmem>>, vector<32x128xf32>
      tpu.vector_store %arg5[%c0_12, %c0_13], %12 {strides = array<i32>} : memref<32x128xf32, #tpu.memory_space<vmem>>, vector<32x128xf32>,
    } else {
    }
    return
  }
  func.func @transform_0(%arg0: i32, %arg1: i32, %arg2: i32) -> (i32, i32) {
    %c0_i32 = arith.constant 0 : i32
    return %arg0, %arg2 : i32, i32
  }
  func.func @transform_1(%arg0: i32, %arg1: i32, %arg2: i32) -> (i32, i32) {
    %c0_i32 = arith.constant 0 : i32
    return %arg2, %arg1 : i32, i32
  }
  func.func @transform_2(%arg0: i32, %arg1: i32, %arg2: i32) -> (i32, i32) {
    %c0_i32 = arith.constant 0 : i32
    return %arg0, %arg1 : i32, i32
  }
}

module attributes {stable_mosaic.version = 11 : i64} {
  func.func @_attn_kernel(%arg0: i32, %arg1: i32, %arg2: memref<1x16x128xf32, #tpu.memory_space<vmem>>, %arg3: memref<1x8x256xf32, #tpu.memory_space<vmem>>, %arg4: memref<1x64xf32, #tpu.memory_space<vmem>>, %arg5: memref<1x64xf32, #tpu.memory_space<vmem>>, %arg6: memref<1x16x128xf32, #tpu.memory_space<vmem>>) attributes {dimension_semantics = [#tpu.dimension_semantics<parallel>, #tpu.dimension_semantics<parallel>], iteration_bounds = array<i64: 2, 1>, scalar_prefetch = 0 : i64, scratch_operands = 0 : i64, tpu.core_type = #tpu.core_type<tc>, window_params = [{transform_indices = @transform_0, window_bounds = array<i64: 1, 16, 128>}, {transform_indices = @transform_1, window_bounds = array<i64: 1, 8, 256>}, {pipeline_mode = #tpu.pipeline_mode<synchronous>, transform_indices = @transform_2, window_bounds = array<i64: 1, 64>}, {pipeline_mode = #tpu.pipeline_mode<synchronous>, transform_indices = @transform_3, window_bounds = array<i64: 1, 64>}, {transform_indices = @transform_4, window_bounds = array<i64: 1, 16, 128>}]} {
    %c0 = arith.constant 0 : index
    %c0_0 = arith.constant 0 : index
    %0 = vector.load %arg4[%c0, %c0_0] : memref<1x64xf32, #tpu.memory_space<vmem>>, vector<1x64xf32>
    %c0_1 = arith.constant 0 : index
    %c0_2 = arith.constant 0 : index
    %1 = vector.load %arg5[%c0_1, %c0_2] : memref<1x64xf32, #tpu.memory_space<vmem>>, vector<1x64xf32>
    %c0_3 = arith.constant 0 : index
    %c0_4 = arith.constant 0 : index
    %c0_5 = arith.constant 0 : index
    %2 = vector.load %arg2[%c0_3, %c0_4, %c0_5] : memref<1x16x128xf32, #tpu.memory_space<vmem>>, vector<1x16x64xf32>
    %3 = vector.shape_cast %2 : vector<1x16x64xf32> to vector<16x64xf32>
    %c0_6 = arith.constant 0 : index
    %c0_7 = arith.constant 0 : index
    %c0_8 = arith.constant 0 : index
    %4 = vector.load %arg3[%c0_6, %c0_7, %c0_8] : memref<1x8x256xf32, #tpu.memory_space<vmem>>, vector<1x8x64xf32>
    %5 = vector.shape_cast %4 : vector<1x8x64xf32> to vector<8x64xf32>
    %c0_9 = arith.constant 0 : index
    %c0_10 = arith.constant 0 : index
    %c64 = arith.constant 64 : index
    %6 = vector.load %arg3[%c0_9, %c0_10, %c64] : memref<1x8x256xf32, #tpu.memory_space<vmem>>, vector<1x8x64xf32>
    %7 = vector.shape_cast %6 : vector<1x8x64xf32> to vector<8x64xf32>
    %8 = arith.mulf %3, %3 : vector<16x64xf32>
    %cst = arith.constant dense<0.000000e+00> : vector<16xf32>
    %9 = vector.multi_reduction <add>, %8, %cst [1] : vector<16x64xf32> to vector<16xf32>
    %10 = vector.shape_cast %9 : vector<16xf32> to vector<16x1xf32>
    %cst_11 = arith.constant 6.400000e+01 : f32
    %11 = vector.broadcast %cst_11 : f32 to vector<16x1xf32>
    %12 = arith.divf %10, %11 : vector<16x1xf32>
    %cst_12 = arith.constant 9.99999997E-7 : f32
    %13 = vector.broadcast %cst_12 : f32 to vector<16x1xf32>
    %14 = arith.addf %12, %13 : vector<16x1xf32>
    %15 = math.rsqrt %14 : vector<16x1xf32>
    %16 = vector.broadcast %15 : vector<16x1xf32> to vector<16x64xf32>
    %17 = arith.mulf %3, %16 : vector<16x64xf32>
    %18 = vector.broadcast %0 : vector<1x64xf32> to vector<16x64xf32>
    %19 = arith.mulf %17, %18 : vector<16x64xf32>
    %20 = arith.mulf %5, %5 : vector<8x64xf32>
    %cst_13 = arith.constant dense<0.000000e+00> : vector<8xf32>
    %21 = vector.multi_reduction <add>, %20, %cst_13 [1] : vector<8x64xf32> to vector<8xf32>
    %22 = vector.shape_cast %21 : vector<8xf32> to vector<8x1xf32>
    %cst_14 = arith.constant 6.400000e+01 : f32
    %23 = vector.broadcast %cst_14 : f32 to vector<8x1xf32>
    %24 = arith.divf %22, %23 : vector<8x1xf32>
    %cst_15 = arith.constant 9.99999997E-7 : f32
    %25 = vector.broadcast %cst_15 : f32 to vector<8x1xf32>
    %26 = arith.addf %24, %25 : vector<8x1xf32>
    %27 = math.rsqrt %26 : vector<8x1xf32>
    %28 = vector.broadcast %27 : vector<8x1xf32> to vector<8x64xf32>
    %29 = arith.mulf %5, %28 : vector<8x64xf32>
    %30 = vector.broadcast %1 : vector<1x64xf32> to vector<8x64xf32>
    %31 = arith.mulf %29, %30 : vector<8x64xf32>
    %cst_16 = arith.constant dense<0.000000e+00> : vector<16x8xf32>
    %32 = tpu.matmul %19, %31, %cst_16 {dimension_numbers = #tpu.dot_dimension_numbers<[1], [1], [0], [0], [0, 0, 1, 0], [], []>} : vector<16x64xf32>, vector<8x64xf32>, vector<16x8xf32> -> vector<16x8xf32>
    %cst_17 = arith.constant 1.250000e-01 : f32
    %33 = vector.broadcast %cst_17 : f32 to vector<16x8xf32>
    %34 = arith.mulf %32, %33 : vector<16x8xf32>
    %cst_18 = arith.constant dense<0xFF800000> : vector<16xf32>
    %35 = vector.multi_reduction <maximumf>, %34, %cst_18 [1] : vector<16x8xf32> to vector<16xf32>
    %36 = vector.shape_cast %35 : vector<16xf32> to vector<16x1xf32>
    %37 = vector.broadcast %36 : vector<16x1xf32> to vector<16x8xf32>
    %38 = arith.subf %34, %37 : vector<16x8xf32>
    %39 = math.exp %38 : vector<16x8xf32>
    %cst_19 = arith.constant dense<0.000000e+00> : vector<16xf32>
    %40 = vector.multi_reduction <add>, %39, %cst_19 [1] : vector<16x8xf32> to vector<16xf32>
    %41 = vector.shape_cast %40 : vector<16xf32> to vector<16x1xf32>
    %cst_20 = arith.constant dense<0.000000e+00> : vector<16x64xf32>
    %42 = tpu.matmul %39, %7, %cst_20 {dimension_numbers = #tpu.dot_dimension_numbers<[1], [0], [0], [1], [0, 0, 1, 1], [], []>} : vector<16x8xf32>, vector<8x64xf32>, vector<16x64xf32> -> vector<16x64xf32>
    %43 = tpu.reciprocal %41 {approx = true} : vector<16x1xf32> -> vector<16x1xf32>
    %44 = vector.broadcast %43 : vector<16x1xf32> to vector<16x64xf32>
    %45 = arith.mulf %42, %44 : vector<16x64xf32>
    %c0_21 = arith.constant 0 : index
    %c0_22 = arith.constant 0 : index
    %c64_23 = arith.constant 64 : index
    %46 = vector.load %arg2[%c0_21, %c0_22, %c64_23] : memref<1x16x128xf32, #tpu.memory_space<vmem>>, vector<1x16x64xf32>
    %47 = vector.shape_cast %46 : vector<1x16x64xf32> to vector<16x64xf32>
    %c0_24 = arith.constant 0 : index
    %c0_25 = arith.constant 0 : index
    %c128 = arith.constant 128 : index
    %48 = vector.load %arg3[%c0_24, %c0_25, %c128] : memref<1x8x256xf32, #tpu.memory_space<vmem>>, vector<1x8x64xf32>
    %49 = vector.shape_cast %48 : vector<1x8x64xf32> to vector<8x64xf32>
    %c0_26 = arith.constant 0 : index
    %c0_27 = arith.constant 0 : index
    %c192 = arith.constant 192 : index
    %50 = vector.load %arg3[%c0_26, %c0_27, %c192] : memref<1x8x256xf32, #tpu.memory_space<vmem>>, vector<1x8x64xf32>
    %51 = vector.shape_cast %50 : vector<1x8x64xf32> to vector<8x64xf32>
    %52 = arith.mulf %47, %47 : vector<16x64xf32>
    %cst_28 = arith.constant dense<0.000000e+00> : vector<16xf32>
    %53 = vector.multi_reduction <add>, %52, %cst_28 [1] : vector<16x64xf32> to vector<16xf32>
    %54 = vector.shape_cast %53 : vector<16xf32> to vector<16x1xf32>
    %cst_29 = arith.constant 6.400000e+01 : f32
    %55 = vector.broadcast %cst_29 : f32 to vector<16x1xf32>
    %56 = arith.divf %54, %55 : vector<16x1xf32>
    %cst_30 = arith.constant 9.99999997E-7 : f32
    %57 = vector.broadcast %cst_30 : f32 to vector<16x1xf32>
    %58 = arith.addf %56, %57 : vector<16x1xf32>
    %59 = math.rsqrt %58 : vector<16x1xf32>
    %60 = vector.broadcast %59 : vector<16x1xf32> to vector<16x64xf32>
    %61 = arith.mulf %47, %60 : vector<16x64xf32>
    %62 = vector.broadcast %0 : vector<1x64xf32> to vector<16x64xf32>
    %63 = arith.mulf %61, %62 : vector<16x64xf32>
    %64 = arith.mulf %49, %49 : vector<8x64xf32>
    %cst_31 = arith.constant dense<0.000000e+00> : vector<8xf32>
    %65 = vector.multi_reduction <add>, %64, %cst_31 [1] : vector<8x64xf32> to vector<8xf32>
    %66 = vector.shape_cast %65 : vector<8xf32> to vector<8x1xf32>
    %cst_32 = arith.constant 6.400000e+01 : f32
    %67 = vector.broadcast %cst_32 : f32 to vector<8x1xf32>
    %68 = arith.divf %66, %67 : vector<8x1xf32>
    %cst_33 = arith.constant 9.99999997E-7 : f32
    %69 = vector.broadcast %cst_33 : f32 to vector<8x1xf32>
    %70 = arith.addf %68, %69 : vector<8x1xf32>
    %71 = math.rsqrt %70 : vector<8x1xf32>
    %72 = vector.broadcast %71 : vector<8x1xf32> to vector<8x64xf32>
    %73 = arith.mulf %49, %72 : vector<8x64xf32>
    %74 = vector.broadcast %1 : vector<1x64xf32> to vector<8x64xf32>
    %75 = arith.mulf %73, %74 : vector<8x64xf32>
    %cst_34 = arith.constant dense<0.000000e+00> : vector<16x8xf32>
    %76 = tpu.matmul %63, %75, %cst_34 {dimension_numbers = #tpu.dot_dimension_numbers<[1], [1], [0], [0], [0, 0, 1, 0], [], []>} : vector<16x64xf32>, vector<8x64xf32>, vector<16x8xf32> -> vector<16x8xf32>
    %cst_35 = arith.constant 1.250000e-01 : f32
    %77 = vector.broadcast %cst_35 : f32 to vector<16x8xf32>
    %78 = arith.mulf %76, %77 : vector<16x8xf32>
    %cst_36 = arith.constant dense<0xFF800000> : vector<16xf32>
    %79 = vector.multi_reduction <maximumf>, %78, %cst_36 [1] : vector<16x8xf32> to vector<16xf32>
    %80 = vector.shape_cast %79 : vector<16xf32> to vector<16x1xf32>
    %81 = vector.broadcast %80 : vector<16x1xf32> to vector<16x8xf32>
    %82 = arith.subf %78, %81 : vector<16x8xf32>
    %83 = math.exp %82 : vector<16x8xf32>
    %cst_37 = arith.constant dense<0.000000e+00> : vector<16xf32>
    %84 = vector.multi_reduction <add>, %83, %cst_37 [1] : vector<16x8xf32> to vector<16xf32>
    %85 = vector.shape_cast %84 : vector<16xf32> to vector<16x1xf32>
    %cst_38 = arith.constant dense<0.000000e+00> : vector<16x64xf32>
    %86 = tpu.matmul %83, %51, %cst_38 {dimension_numbers = #tpu.dot_dimension_numbers<[1], [0], [0], [1], [0, 0, 1, 1], [], []>} : vector<16x8xf32>, vector<8x64xf32>, vector<16x64xf32> -> vector<16x64xf32>
    %87 = tpu.reciprocal %85 {approx = true} : vector<16x1xf32> -> vector<16x1xf32>
    %88 = vector.broadcast %87 : vector<16x1xf32> to vector<16x64xf32>
    %89 = arith.mulf %86, %88 : vector<16x64xf32>
    %90 = tpu.concatenate %45, %89 in 1 : vector<16x64xf32>, vector<16x64xf32> -> vector<16x128xf32>
    %c0_39 = arith.constant 0 : index
    %c0_40 = arith.constant 0 : index
    %c0_41 = arith.constant 0 : index
    %91 = vector.load %arg6[%c0_39, %c0_40, %c0_41] : memref<1x16x128xf32, #tpu.memory_space<vmem>>, vector<1x16x128xf32>
    %92 = vector.shape_cast %91 : vector<1x16x128xf32> to vector<16x128xf32>
    %93 = vector.shape_cast %90 : vector<16x128xf32> to vector<1x16x128xf32>
    tpu.vector_store %arg6[%c0_39, %c0_40, %c0_41], %93 {strides = array<i32>} : memref<1x16x128xf32, #tpu.memory_space<vmem>>, vector<1x16x128xf32>,
    return
  }
  func.func @transform_0(%arg0: i32, %arg1: i32) -> (i32, i32, i32) {
    %c0_i32 = arith.constant 0 : i32
    %c0_i32_0 = arith.constant 0 : i32
    return %arg0, %arg1, %c0_i32 : i32, i32, i32
  }
  func.func @transform_1(%arg0: i32, %arg1: i32) -> (i32, i32, i32) {
    %c0_i32 = arith.constant 0 : i32
    %c0_i32_0 = arith.constant 0 : i32
    %c0_i32_1 = arith.constant 0 : i32
    return %arg0, %c0_i32, %c0_i32_0 : i32, i32, i32
  }
  func.func @transform_2(%arg0: i32, %arg1: i32) -> (i32, i32) {
    %c0_i32 = arith.constant 0 : i32
    %c0_i32_0 = arith.constant 0 : i32
    %c0_i32_1 = arith.constant 0 : i32
    return %c0_i32, %c0_i32_0 : i32, i32
  }
  func.func @transform_3(%arg0: i32, %arg1: i32) -> (i32, i32) {
    %c0_i32 = arith.constant 0 : i32
    %c0_i32_0 = arith.constant 0 : i32
    %c0_i32_1 = arith.constant 0 : i32
    return %c0_i32, %c0_i32_0 : i32, i32
  }
  func.func @transform_4(%arg0: i32, %arg1: i32) -> (i32, i32, i32) {
    %c0_i32 = arith.constant 0 : i32
    %c0_i32_0 = arith.constant 0 : i32
    return %arg0, %arg1, %c0_i32 : i32, i32, i32
  }
}

module attributes {stable_mosaic.version = 11 : i64} {
  func.func @_matmul_kernel(%arg0: i32, %arg1: i32, %arg2: i32, %arg3: memref<16x128xf32, #tpu.memory_space<vmem>>, %arg4: memref<128x256xf32, #tpu.memory_space<vmem>>, %arg5: memref<16x256xf32, #tpu.memory_space<vmem>>, %arg6: memref<16x256xf32, #tpu.memory_space<vmem>>) attributes {dimension_semantics = [#tpu.dimension_semantics<parallel>, #tpu.dimension_semantics<parallel>, #tpu.dimension_semantics<arbitrary>], iteration_bounds = array<i64: 1, 1, 1>, scalar_prefetch = 0 : i64, scratch_operands = 1 : i64, tpu.core_type = #tpu.core_type<tc>, window_params = [{transform_indices = @transform_0, window_bounds = array<i64: 16, 128>}, {transform_indices = @transform_1, window_bounds = array<i64: 128, 256>}, {transform_indices = @transform_2, window_bounds = array<i64: 16, 256>}]} {
    %c0_i32 = arith.constant 0 : i32
    %0 = arith.cmpi eq, %arg2, %c0_i32 : i32
    %1 = arith.extui %0 : i1 to i32
    %c0_i32_0 = arith.constant 0 : i32
    %2 = arith.cmpi ne, %1, %c0_i32_0 : i32
    scf.if %2 {
      %cst_10 = arith.constant 0.000000e+00 : f32
      %12 = vector.broadcast %cst_10 : f32 to vector<16x256xf32>
      %c0_11 = arith.constant 0 : index
      %c0_12 = arith.constant 0 : index
      %13 = vector.load %arg6[%c0_11, %c0_12] : memref<16x256xf32, #tpu.memory_space<vmem>>, vector<16x256xf32>
      tpu.vector_store %arg6[%c0_11, %c0_12], %12 {strides = array<i32>} : memref<16x256xf32, #tpu.memory_space<vmem>>, vector<16x256xf32>,
    } else {
    }
    %c0 = arith.constant 0 : index
    %c0_1 = arith.constant 0 : index
    %3 = vector.load %arg6[%c0, %c0_1] : memref<16x256xf32, #tpu.memory_space<vmem>>, vector<16x256xf32>
    %c0_2 = arith.constant 0 : index
    %c0_3 = arith.constant 0 : index
    %4 = vector.load %arg3[%c0_2, %c0_3] : memref<16x128xf32, #tpu.memory_space<vmem>>, vector<16x128xf32>
    %c0_4 = arith.constant 0 : index
    %c0_5 = arith.constant 0 : index
    %5 = vector.load %arg4[%c0_4, %c0_5] : memref<128x256xf32, #tpu.memory_space<vmem>>, vector<128x256xf32>
    %cst = arith.constant dense<0.000000e+00> : vector<16x256xf32>
    %6 = tpu.matmul %4, %5, %cst {dimension_numbers = #tpu.dot_dimension_numbers<[1], [0], [0], [1], [0, 0, 1, 1], [], []>} : vector<16x128xf32>, vector<128x256xf32>, vector<16x256xf32> -> vector<16x256xf32>
    %7 = arith.addf %3, %6 : vector<16x256xf32>
    %c0_6 = arith.constant 0 : index
    %c0_7 = arith.constant 0 : index
    %8 = vector.load %arg6[%c0_6, %c0_7] : memref<16x256xf32, #tpu.memory_space<vmem>>, vector<16x256xf32>
    tpu.vector_store %arg6[%c0_6, %c0_7], %7 {strides = array<i32>} : memref<16x256xf32, #tpu.memory_space<vmem>>, vector<16x256xf32>,
    %c0_i32_8 = arith.constant 0 : i32
    %9 = arith.cmpi eq, %arg2, %c0_i32_8 : i32
    %10 = arith.extui %9 : i1 to i32
    %c0_i32_9 = arith.constant 0 : i32
    %11 = arith.cmpi ne, %10, %c0_i32_9 : i32
    scf.if %11 {
      %c0_10 = arith.constant 0 : index
      %c0_11 = arith.constant 0 : index
      %12 = vector.load %arg6[%c0_10, %c0_11] : memref<16x256xf32, #tpu.memory_space<vmem>>, vector<16x256xf32>
      %c0_12 = arith.constant 0 : index
      %c0_13 = arith.constant 0 : index
      %13 = vector.load %arg5[%c0_12, %c0_13] : memref<16x256xf32, #tpu.memory_space<vmem>>, vector<16x256xf32>
      tpu.vector_store %arg5[%c0_12, %c0_13], %12 {strides = array<i32>} : memref<16x256xf32, #tpu.memory_space<vmem>>, vector<16x256xf32>,
    } else {
    }
    return
  }
  func.func @transform_0(%arg0: i32, %arg1: i32, %arg2: i32) -> (i32, i32) {
    %c0_i32 = arith.constant 0 : i32
    return %arg0, %arg2 : i32, i32
  }
  func.func @transform_1(%arg0: i32, %arg1: i32, %arg2: i32) -> (i32, i32) {
    %c0_i32 = arith.constant 0 : i32
    return %arg2, %arg1 : i32, i32
  }
  func.func @transform_2(%arg0: i32, %arg1: i32, %arg2: i32) -> (i32, i32) {
    %c0_i32 = arith.constant 0 : i32
    return %arg0, %arg1 : i32, i32
  }
}

</mosaic_0001>

<bundles_post_ra>
// kernel: _lambda_.4
= control target key start
LH: loop header
LB: loop body
LE: loop exit
PB: predicated region body
PF: predicated region fallthrough
CT: control target
= control target key end

     0   :  { %7 = vsyncpa [#allocation4], 0  ;;  %s394_s0 = inlined_call_operand.hbm [shape: f32[32,128], index: 0, kind: input, shape index: {}]   ;;  %s395_s1 = inlined_call_operand.hbm [shape: f32[128,128], index: 1, kind: input, shape index: {}]   ;;  %s396_s2 = inlined_call_operand.vmem [shape: f32[32,128], index: 2, kind: output, shape index: {}]  }
   0x1   :  { %8 = vsyncpa [#allocation6], 0  ;;  %s339_s9 = smov [#allocation3]   ;;  %s291_s13 = scalar_lea.hbm %s394_s0, 512 }
   0x2   :  { %s14_s10 = sshll.u32 %s339_s9, 4  ;;  %p292_p0 = scmp.ne.s32.totalorder %s394_s0, %s291_s13  ;;  %s15_s10 = int_to_ptr.vmem [resolvable:$true] %s14_s10 }
   0x3   :  { %p295_p1 = scmp.lt.u32.totalorder %s291_s13, %s394_s0 }
   0x5   :  { %p297_p2 = pnand %p295_p1, %p292_p0 }
   0x7   :  { %300 = shalt.err (!%p297_p2)
}
   0x8   :  { %s301_s18 = scalar_lea.vmem %s15_s10, 512  ;;  %p306_p4 = scmp.lt.s32.totalorder %s15_s10, %s15_s10 }
   0x9   :  { %p302_p3 = scmp.ne.s32.totalorder %s15_s10, %s301_s18  ;;  %p307_p5 = scmp.lt.s32.totalorder %s301_s18, %s301_s18 }
   0xb   :  { %p308_p6 = por %p307_p5, %p306_p4 }
   0xd   :  { %p309_p7 = pnand %p308_p6, %p302_p3 }
   0xf   :  { %312 = shalt.err (!%p309_p7)
}
  0x10   :  { %s340_s19 = smov 128   ;;  %s341_s20 = smov 8  }
  0x11   :  { %20 = dma.hbm_to_vmem [thread:$0]  %s394_s0, 512, %s15_s10, [#allocation4], %s340_s19, %s340_s19, %s341_s20  }
  0x12   :  { %s342_s23 = smov [#allocation5]   ;;  %s313_s27 = scalar_lea.hbm %s395_s1, 2048 }
  0x13   :  { %s26_s24 = sshll.u32 %s342_s23, 4  ;;  %p314_p8 = scmp.ne.s32.totalorder %s395_s1, %s313_s27  ;;  %s27_s24 = int_to_ptr.vmem [resolvable:$true] %s26_s24 }
  0x14   :  { %p317_p9 = scmp.lt.u32.totalorder %s313_s27, %s395_s1 }
  0x16   :  { %p319_p10 = pnand %p317_p9, %p314_p8 }
  0x18   :  { %322 = shalt.err (!%p319_p10)
}
  0x19   :  { %s323_s4 = scalar_lea.vmem %s27_s24, 2048  ;;  %p328_p12 = scmp.lt.s32.totalorder %s27_s24, %s27_s24 }
  0x1a   :  { %p324_p11 = scmp.ne.s32.totalorder %s27_s24, %s323_s4  ;;  %p329_p13 = scmp.lt.s32.totalorder %s323_s4, %s323_s4 }
  0x1c   :  { %p330_p0 = por %p329_p13, %p328_p12 }
  0x1e   :  { %p331_p1 = pnand %p330_p0, %p324_p11 }
  0x20   :  { %334 = shalt.err (!%p331_p1)
}
  0x21   :  { %32 = dma.hbm_to_vmem [thread:$0]  %s395_s1, 2048, %s27_s24, [#allocation6], %s340_s19, %s340_s19, %s341_s20  }
  0x22   :  { %335 = dma.done.wait [#allocation4], 512  }
  0x23   :  { %336 = vsyncadd [#allocation4], 4294966784 }
  0x24   :  { %337 = dma.done.wait [#allocation6], 2048  }
  0x25   :  { %338 = vsyncadd [#allocation6], 4294965248  ;;  %v55_v0 = vld [vmem:[#allocation5] sm:$0xff]  ;;  %v56_v1 = vld [vmem:[#allocation5 + $0x8] sm:$0xff] }
  0x26   :  { %v57_v2 = vld [vmem:[#allocation5 + $0x10] sm:$0xff]  ;;  %v239_v3 = vpack.c.bf16 %v56_v1, %v55_v0  ;;  %v58_v4 = vld [vmem:[#allocation5 + $0x18] sm:$0xff]  ;;  %v59_v6 = vld [vmem:[#allocation5 + $0x20] sm:$0xff] }
  0x27   :  { %v243_v5 = vpack.c.bf16 %v58_v4, %v57_v2  ;;  %v60_v7 = vld [vmem:[#allocation5 + $0x28] sm:$0xff]  ;;  %v51_v9 = vld [vmem:[#allocation3] sm:$0xff]  ;;  %v53_v10 = vld [vmem:[#allocation3 + $0x10] sm:$0xff] }
  0x28   :  { %240 = vmatprep.subr.bf16.mxu0 %v239_v3  ;;  %271 = vmatprep.subr.bf16.mxu1 %v239_v3  ;;  %v247_v8 = vpack.c.bf16 %v60_v7, %v59_v6  ;;  %v61_v11 = vld [vmem:[#allocation5 + $0x30] sm:$0xff]  ;;  %v62_v12 = vld [vmem:[#allocation5 + $0x38] sm:$0xff]  ;;  %v63_v14 = vld [vmem:[#allocation5 + $0x40] sm:$0xff] }
  0x29   :  { %242 = vmatpush3.bf16.msra.mxu0 %v239_v3  ;;  %279 = vmatpush3.bf16.msra.mxu1 %v239_v3  ;;  %v251_v13 = vpack.c.bf16 %v62_v12, %v61_v11  ;;  %v64_v15 = vld [vmem:[#allocation5 + $0x48] sm:$0xff]  ;;  %v65_v17 = vld [vmem:[#allocation5 + $0x50] sm:$0xff]  ;;  %v66_v18 = vld [vmem:[#allocation5 + $0x58] sm:$0xff] }
  0x2a   :  { %244 = vmatprep.subr.bf16.mxu0 %v243_v5  ;;  %272 = vmatprep.subr.bf16.mxu1 %v243_v5  ;;  %v255_v16 = vpack.c.bf16 %v64_v15, %v63_v14  ;;  %v259_v19 = vpack.c.bf16 %v66_v18, %v65_v17  ;;  %v67_v20 = vld [vmem:[#allocation5 + $0x60] sm:$0xff]  ;;  %v68_v21 = vld [vmem:[#allocation5 + $0x68] sm:$0xff]  ;;  %v69_v23 = vld [vmem:[#allocation5 + $0x70] sm:$0xff] }
  0x2b   :  { %233 = vmatprep.mubr.f32.mxu0 %v51_v9  ;;  %236 = vmatprep.mubr.f32.mxu1 %v53_v10  ;;  %v263_v22 = vpack.c.bf16 %v68_v21, %v67_v20  ;;  %v70_v24 = vld [vmem:[#allocation5 + $0x78] sm:$0xff]  ;;  %v52_v26 = vld [vmem:[#allocation3 + $0x8] sm:$0xff] }
  0x2c   :  { %v267_v25 = vpack.c.bf16 %v70_v24, %v69_v23  ;;  %v54_v27 = vld [vmem:[#allocation3 + $0x18] sm:$0xff] }
  0x2d   :  { %246 = vmatpush3.bf16.msra.mxu0 %v243_v5  ;;  %280 = vmatpush3.bf16.msra.mxu1 %v243_v5 }
  0x2e   :  { %248 = vmatprep.subr.bf16.mxu0 %v247_v8  ;;  %273 = vmatprep.subr.bf16.mxu1 %v247_v8 }
  0x31   :  { %250 = vmatpush3.bf16.msra.mxu0 %v247_v8  ;;  %281 = vmatpush3.bf16.msra.mxu1 %v247_v8 }
  0x32   :  { %252 = vmatprep.subr.bf16.mxu0 %v251_v13  ;;  %274 = vmatprep.subr.bf16.mxu1 %v251_v13 }
  0x35   :  { %254 = vmatpush3.bf16.msra.mxu0 %v251_v13  ;;  %282 = vmatpush3.bf16.msra.mxu1 %v251_v13 }
  0x36   :  { %256 = vmatprep.subr.bf16.mxu0 %v255_v16  ;;  %275 = vmatprep.subr.bf16.mxu1 %v255_v16 }
  0x39   :  { %258 = vmatpush3.bf16.msra.mxu0 %v255_v16  ;;  %283 = vmatpush3.bf16.msra.mxu1 %v255_v16 }
  0x3a   :  { %260 = vmatprep.subr.bf16.mxu0 %v259_v19  ;;  %276 = vmatprep.subr.bf16.mxu1 %v259_v19 }
  0x3d   :  { %262 = vmatpush3.bf16.msra.mxu0 %v259_v19  ;;  %284 = vmatpush3.bf16.msra.mxu1 %v259_v19 }
  0x3e   :  { %264 = vmatprep.subr.bf16.mxu0 %v263_v22  ;;  %277 = vmatprep.subr.bf16.mxu1 %v263_v22 }
  0x41   :  { %266 = vmatpush3.bf16.msra.mxu0 %v263_v22  ;;  %285 = vmatpush3.bf16.msra.mxu1 %v263_v22 }
  0x42   :  { %268 = vmatprep.subr.bf16.mxu0 %v267_v25  ;;  %278 = vmatprep.subr.bf16.mxu1 %v267_v25 }
  0x45   :  { %270 = vmatpush3.bf16.msra.mxu0 %v267_v25  ;;  %286 = vmatpush3.bf16.msra.mxu1 %v267_v25 }
  0x48   :  { %234 = vmatmul.mubr.f32.vlgmr.msra.gmra.mrb[0].mxu0 %v52_v26  ;;  %237 = vmatmul.mubr.f32.vlgmr.msra.gmra.mrb[0].mxu1 %v54_v27 }
 0x11b   :  { %v235_v28 = vpop.f32.mrb[0].mxu0  ;;  %v238_v29 = vpop.f32.mrb[0].mxu1 }
 0x11c   :  { %172 = vst [vmem:[%s396_s2 + $0x8] sm:$0xff] %v235_v28  ;;  %174 = vst [vmem:[%s396_s2 + $0x18] sm:$0xff] %v238_v29  ;;  %v137_v30 = vpop.f32.mrb[1].mxu0  ;;  %v147_v31 = vpop.f32.mrb[1].mxu1 }
 0x11d   :  { %171 = vst [vmem:[%s396_s2] sm:$0xff] %v137_v30  ;;  %173 = vst [vmem:[%s396_s2 + $0x10] sm:$0xff] %v147_v31 }
 0x11e   :  { %179 = vsyncpa [#allocation4], 1 }
 0x11f   :  { %180 = vsyncpa [#allocation6], 1 }

// kernel: _lambda_.5
= control target key start
LH: loop header
LB: loop body
LE: loop exit
PB: predicated region body
PF: predicated region fallthrough
CT: control target
= control target key end

     0   :  { %7 = vsyncpa [#allocation4], 0  ;;  %s248_s9 = smov [#allocation3]   ;;  %s297_s0 = inlined_call_operand.vmem [shape: f32[16,128], index: 0, kind: input, shape index: {}]   ;;  %s298_s1 = inlined_call_operand.hbm [shape: f32[128,256], index: 1, kind: input, shape index: {}]   ;;  %s299_s2 = inlined_call_operand.vmem [shape: f32[16,256], index: 2, kind: output, shape index: {}]  }
   0x1   :  { %s15_s10 = sshll.u32 %s248_s9, 4  ;;  %s224_s13 = scalar_lea.hbm %s298_s1, 4096  ;;  %s16_s10 = int_to_ptr.vmem [resolvable:$true] %s15_s10 }
   0x2   :  { %p225_p0 = scmp.ne.s32.totalorder %s298_s1, %s224_s13  ;;  %p228_p1 = scmp.lt.u32.totalorder %s224_s13, %s298_s1 }
   0x4   :  { %p230_p2 = pnand %p228_p1, %p225_p0 }
   0x6   :  { %233 = shalt.err (!%p230_p2)
}
   0x7   :  { %s234_s18 = scalar_lea.vmem %s16_s10, 4096  ;;  %p239_p4 = scmp.lt.s32.totalorder %s16_s10, %s16_s10 }
   0x8   :  { %p235_p3 = scmp.ne.s32.totalorder %s16_s10, %s234_s18  ;;  %p240_p5 = scmp.lt.s32.totalorder %s234_s18, %s234_s18 }
   0xa   :  { %p241_p6 = por %p240_p5, %p239_p4 }
   0xc   :  { %p242_p7 = pnand %p241_p6, %p235_p3 }
   0xe   :  { %245 = shalt.err (!%p242_p7)
}
   0xf   :  { %s249_s19 = smov 256   ;;  %s250_s20 = smov 16  }
  0x10   :  { %21 = dma.hbm_to_vmem [thread:$0]  %s298_s1, 4096, %s16_s10, [#allocation4], %s249_s19, %s249_s19, %s250_s20  }
  0x11   :  { %246 = dma.done.wait [#allocation4], 4096  }
  0x12   :  { %247 = vsyncadd [#allocation4], 4294963200  ;;  %v251_v0 = vmov 0.0   ;;  %v40_v1 = vld [vmem:[#allocation3 + $0x8] sm:$0xff]  ;;  %v42_v2 = vld [vmem:[#allocation3 + $0x18] sm:$0xff] }
  0x13   :  { %135 = vmatprep.mubr.f32.mxu0 %v251_v0  ;;  %141 = vmatprep.mubr.f32.mxu1 %v251_v0  ;;  %v39_v3 = vld [vmem:[#allocation3] sm:$0xff]  ;;  %v172_v4 = vpack.c.bf16 %v42_v2, %v40_v1  ;;  %v41_v5 = vld [vmem:[#allocation3 + $0x10] sm:$0xff]  ;;  %v44_v6 = vld [vmem:[#allocation3 + $0x28] sm:$0xff] }
  0x14   :  { %v46_v7 = vld [vmem:[#allocation3 + $0x38] sm:$0xff]  ;;  %v174_v8 = vpack.c.bf16 %v41_v5, %v39_v3  ;;  %v43_v10 = vld [vmem:[#allocation3 + $0x20] sm:$0xff]  ;;  %v45_v11 = vld [vmem:[#allocation3 + $0x30] sm:$0xff] }
  0x15   :  { %v176_v9 = vpack.c.bf16 %v46_v7, %v44_v6  ;;  %v48_v12 = vld [vmem:[#allocation3 + $0x48] sm:$0xff]  ;;  %173 = vmatprep.subr.bf16.mxu0 %v172_v4  ;;  %204 = vmatprep.subr.bf16.mxu1 %v172_v4  ;;  %v50_v13 = vld [vmem:[#allocation3 + $0x58] sm:$0xff]  ;;  %v178_v14 = vpack.c.bf16 %v45_v11, %v43_v10  ;;  %v47_v16 = vld [vmem:[#allocation3 + $0x40] sm:$0xff] }
  0x16   :  { %175 = vmatpush1.bf16.msra.mxu0 %v174_v8  ;;  %212 = vmatpush1.bf16.msra.mxu1 %v174_v8  ;;  %v180_v15 = vpack.c.bf16 %v50_v13, %v48_v12  ;;  %v49_v17 = vld [vmem:[#allocation3 + $0x50] sm:$0xff]  ;;  %v52_v18 = vld [vmem:[#allocation3 + $0x68] sm:$0xff]  ;;  %v54_v19 = vld [vmem:[#allocation3 + $0x78] sm:$0xff] }
  0x17   :  { %177 = vmatprep.subr.bf16.mxu0 %v176_v9  ;;  %205 = vmatprep.subr.bf16.mxu1 %v176_v9  ;;  %v182_v20 = vpack.c.bf16 %v49_v17, %v47_v16  ;;  %v184_v21 = vpack.c.bf16 %v54_v19, %v52_v18  ;;  %v51_v22 = vld [vmem:[#allocation3 + $0x60] sm:$0xff]  ;;  %v53_v23 = vld [vmem:[#allocation3 + $0x70] sm:$0xff]  ;;  %v56_v24 = vld [vmem:[#allocation3 + $0x88] sm:$0xff] }
  0x18   :  { %v58_v25 = vld [vmem:[#allocation3 + $0x98] sm:$0xff]  ;;  %v186_v26 = vpack.c.bf16 %v53_v23, %v51_v22  ;;  %v55_v28 = vld [vmem:[#allocation3 + $0x80] sm:$0xff]  ;;  %v57_v29 = vld [vmem:[#allocation3 + $0x90] sm:$0xff] }
  0x19   :  { %v188_v27 = vpack.c.bf16 %v58_v25, %v56_v24  ;;  %v60_v30 = vld [vmem:[#allocation3 + $0xa8] sm:$0xff]  ;;  %v62_v31 = vld [vmem:[#allocation3 + $0xb8] sm:$0xff]  ;;  %v190_v32 = vpack.c.bf16 %v57_v29, %v55_v28  ;;  %v59_v34 = vld [vmem:[#allocation3 + $0xa0] sm:$0xff] }
  0x1a   :  { %179 = vmatpush1.bf16.msra.mxu0 %v178_v14  ;;  %213 = vmatpush1.bf16.msra.mxu1 %v178_v14  ;;  %v192_v33 = vpack.c.bf16 %v62_v31, %v60_v30  ;;  %v61_v35 = vld [vmem:[#allocation3 + $0xb0] sm:$0xff]  ;;  %v64_v36 = vld [vmem:[#allocation3 + $0xc8] sm:$0xff]  ;;  %v66_v37 = vld [vmem:[#allocation3 + $0xd8] sm:$0xff] }
  0x1b   :  { %181 = vmatprep.subr.bf16.mxu0 %v180_v15  ;;  %206 = vmatprep.subr.bf16.mxu1 %v180_v15  ;;  %v194_v38 = vpack.c.bf16 %v61_v35, %v59_v34  ;;  %v196_v39 = vpack.c.bf16 %v66_v37, %v64_v36  ;;  %v63_v40 = vld [vmem:[#allocation3 + $0xc0] sm:$0xff]  ;;  %v65_v41 = vld [vmem:[#allocation3 + $0xd0] sm:$0xff]  ;;  %v68_v42 = vld [vmem:[#allocation3 + $0xe8] sm:$0xff] }
  0x1c   :  { %v70_v43 = vld [vmem:[#allocation3 + $0xf8] sm:$0xff]  ;;  %v198_v44 = vpack.c.bf16 %v65_v41, %v63_v40  ;;  %v67_v46 = vld [vmem:[#allocation3 + $0xe0] sm:$0xff]  ;;  %v69_v47 = vld [vmem:[#allocation3 + $0xf0] sm:$0xff] }
  0x1d   :  { %v200_v45 = vpack.c.bf16 %v70_v43, %v68_v42  ;;  %v202_v48 = vpack.c.bf16 %v69_v47, %v67_v46  ;;  %v37_v49 = vld [vmem:[%s297_s0] sm:$0xff]  ;;  %v38_v50 = vld [vmem:[%s297_s0 + $0x8] sm:$0xff] }
  0x1e   :  { %183 = vmatpush1.bf16.msra.mxu0 %v182_v20  ;;  %214 = vmatpush1.bf16.msra.mxu1 %v182_v20 }
  0x1f   :  { %185 = vmatprep.subr.bf16.mxu0 %v184_v21  ;;  %207 = vmatprep.subr.bf16.mxu1 %v184_v21 }
  0x22   :  { %187 = vmatpush1.bf16.msra.mxu0 %v186_v26  ;;  %215 = vmatpush1.bf16.msra.mxu1 %v186_v26 }
  0x23   :  { %189 = vmatprep.subr.bf16.mxu0 %v188_v27  ;;  %208 = vmatprep.subr.bf16.mxu1 %v188_v27 }
  0x26   :  { %191 = vmatpush1.bf16.msra.mxu0 %v190_v32  ;;  %216 = vmatpush1.bf16.msra.mxu1 %v190_v32 }
  0x27   :  { %193 = vmatprep.subr.bf16.mxu0 %v192_v33  ;;  %209 = vmatprep.subr.bf16.mxu1 %v192_v33 }
  0x2a   :  { %195 = vmatpush1.bf16.msra.mxu0 %v194_v38  ;;  %217 = vmatpush1.bf16.msra.mxu1 %v194_v38 }
  0x2b   :  { %197 = vmatprep.subr.bf16.mxu0 %v196_v39  ;;  %210 = vmatprep.subr.bf16.mxu1 %v196_v39 }
  0x2e   :  { %199 = vmatpush1.bf16.msra.mxu0 %v198_v44  ;;  %218 = vmatpush1.bf16.msra.mxu1 %v198_v44 }
  0x2f   :  { %201 = vmatprep.subr.bf16.mxu0 %v200_v45  ;;  %211 = vmatprep.subr.bf16.mxu1 %v200_v45 }
  0x32   :  { %203 = vmatpush1.bf16.msra.mxu0 %v202_v48  ;;  %219 = vmatpush1.bf16.msra.mxu1 %v202_v48 }
  0x35   :  { %136 = vmatmul.mubr.f32.vlgmr.msra.gmra.mrb[0].mxu0 %v37_v49  ;;  %142 = vmatmul.mubr.f32.vlgmr.msra.gmra.mrb[0].mxu1 %v38_v50 }
 0x108   :  { %v137_v51 = vpop.f32.mrb[0].mxu0  ;;  %v143_v52 = vpop.f32.mrb[0].mxu1 }
 0x109   :  { %163 = vst [vmem:[%s299_s2] sm:$0xff] %v137_v51  ;;  %165 = vst [vmem:[%s299_s2 + $0x10] sm:$0xff] %v143_v52  ;;  %v139_v53 = vpop.f32.mrb[1].mxu0  ;;  %v145_v54 = vpop.f32.mrb[1].mxu1 }
 0x10a   :  { %164 = vst [vmem:[%s299_s2 + $0x8] sm:$0xff] %v139_v53  ;;  %166 = vst [vmem:[%s299_s2 + $0x18] sm:$0xff] %v145_v54 }
 0x10b   :  { %171 = vsyncpa [#allocation4], 1 }

// kernel: _lambda_.7
= control target key start
LH: loop header
LB: loop body
LE: loop exit
PB: predicated region body
PF: predicated region fallthrough
CT: control target
= control target key end

     0   :  { %s387_s0 = inlined_call_operand.vmem [shape: f32[32,128], index: 0, kind: input, shape index: {}]   ;;  %s388_s1 = inlined_call_operand.vmem [shape: f32[128,128], index: 1, kind: input, shape index: {}]   ;;  %s389_s2 = inlined_call_operand.hbm [shape: f32[32,128], index: 2, kind: output, shape index: {}]  }
   0x1   :  { %v28_v0 = vld [vmem:[%s388_s1] sm:$0xff]  ;;  %v29_v1 = vld [vmem:[%s388_s1 + $0x8] sm:$0xff]  ;;  %v30_v2 = vld [vmem:[%s388_s1 + $0x10] sm:$0xff] }
   0x2   :  { %v222_v3 = vpack.c.bf16 %v29_v1, %v28_v0  ;;  %v31_v4 = vld [vmem:[%s388_s1 + $0x18] sm:$0xff]  ;;  %v32_v6 = vld [vmem:[%s388_s1 + $0x20] sm:$0xff]  ;;  %v33_v7 = vld [vmem:[%s388_s1 + $0x28] sm:$0xff] }
   0x3   :  { %v226_v5 = vpack.c.bf16 %v31_v4, %v30_v2  ;;  %v230_v8 = vpack.c.bf16 %v33_v7, %v32_v6  ;;  %v24_v9 = vld [vmem:[%s387_s0] sm:$0xff]  ;;  %v26_v10 = vld [vmem:[%s387_s0 + $0x10] sm:$0xff]  ;;  %v35_v12 = vld [vmem:[%s388_s1 + $0x38] sm:$0xff] }
   0x4   :  { %223 = vmatprep.subr.bf16.mxu0 %v222_v3  ;;  %254 = vmatprep.subr.bf16.mxu1 %v222_v3  ;;  %v34_v11 = vld [vmem:[%s388_s1 + $0x30] sm:$0xff] }
   0x5   :  { %225 = vmatpush3.bf16.msra.mxu0 %v222_v3  ;;  %262 = vmatpush3.bf16.msra.mxu1 %v222_v3 }
   0x6   :  { %227 = vmatprep.subr.bf16.mxu0 %v226_v5  ;;  %255 = vmatprep.subr.bf16.mxu1 %v226_v5 }
   0x7   :  { %216 = vmatprep.mubr.f32.mxu0 %v24_v9  ;;  %219 = vmatprep.mubr.f32.mxu1 %v26_v10 }
   0x8   :  { %7 = vsyncpa [#allocation4], 0  ;;  %v234_v13 = vpack.c.bf16 %v35_v12, %v34_v11  ;;  %v36_v14 = vld [vmem:[%s388_s1 + $0x40] sm:$0xff]  ;;  %v37_v15 = vld [vmem:[%s388_s1 + $0x48] sm:$0xff] }
   0x9   :  { %229 = vmatpush3.bf16.msra.mxu0 %v226_v5  ;;  %263 = vmatpush3.bf16.msra.mxu1 %v226_v5  ;;  %v238_v16 = vpack.c.bf16 %v37_v15, %v36_v14  ;;  %v38_v17 = vld [vmem:[%s388_s1 + $0x50] sm:$0xff]  ;;  %v39_v18 = vld [vmem:[%s388_s1 + $0x58] sm:$0xff]  ;;  %v40_v20 = vld [vmem:[%s388_s1 + $0x60] sm:$0xff] }
   0xa   :  { %231 = vmatprep.subr.bf16.mxu0 %v230_v8  ;;  %256 = vmatprep.subr.bf16.mxu1 %v230_v8  ;;  %v242_v19 = vpack.c.bf16 %v39_v18, %v38_v17  ;;  %v41_v21 = vld [vmem:[%s388_s1 + $0x68] sm:$0xff]  ;;  %v42_v23 = vld [vmem:[%s388_s1 + $0x70] sm:$0xff]  ;;  %v43_v24 = vld [vmem:[%s388_s1 + $0x78] sm:$0xff]  ;;  %s297_s1 = smov [#allocation3]  }
   0xb   :  { %v246_v22 = vpack.c.bf16 %v41_v21, %v40_v20  ;;  %v250_v25 = vpack.c.bf16 %v43_v24, %v42_v23  ;;  %v25_v26 = vld [vmem:[%s387_s0 + $0x8] sm:$0xff]  ;;  %v27_v27 = vld [vmem:[%s387_s0 + $0x18] sm:$0xff]  ;;  %s153_s21 = sshll.u32 %s297_s1, 4  ;;  %s154_s21 = int_to_ptr.vmem [resolvable:$true] %s153_s21 }
   0xc   :  { %s273_s22 = scalar_lea.vmem %s154_s21, 512  ;;  %p278_p1 = scmp.lt.s32.totalorder %s154_s21, %s154_s21 }
   0xd   :  { %233 = vmatpush3.bf16.msra.mxu0 %v230_v8  ;;  %264 = vmatpush3.bf16.msra.mxu1 %v230_v8  ;;  %p274_p0 = scmp.ne.s32.totalorder %s154_s21, %s273_s22  ;;  %p279_p2 = scmp.lt.s32.totalorder %s273_s22, %s273_s22 }
   0xe   :  { %235 = vmatprep.subr.bf16.mxu0 %v234_v13  ;;  %257 = vmatprep.subr.bf16.mxu1 %v234_v13 }
   0xf   :  { %p280_p3 = por %p279_p2, %p278_p1 }
  0x11   :  { %237 = vmatpush3.bf16.msra.mxu0 %v234_v13  ;;  %265 = vmatpush3.bf16.msra.mxu1 %v234_v13  ;;  %p281_p4 = pnand %p280_p3, %p274_p0 }
  0x12   :  { %239 = vmatprep.subr.bf16.mxu0 %v238_v16  ;;  %258 = vmatprep.subr.bf16.mxu1 %v238_v16 }
  0x15   :  { %241 = vmatpush3.bf16.msra.mxu0 %v238_v16  ;;  %266 = vmatpush3.bf16.msra.mxu1 %v238_v16 }
  0x16   :  { %243 = vmatprep.subr.bf16.mxu0 %v242_v19  ;;  %259 = vmatprep.subr.bf16.mxu1 %v242_v19 }
  0x19   :  { %245 = vmatpush3.bf16.msra.mxu0 %v242_v19  ;;  %267 = vmatpush3.bf16.msra.mxu1 %v242_v19 }
  0x1a   :  { %247 = vmatprep.subr.bf16.mxu0 %v246_v22  ;;  %260 = vmatprep.subr.bf16.mxu1 %v246_v22 }
  0x1d   :  { %249 = vmatpush3.bf16.msra.mxu0 %v246_v22  ;;  %268 = vmatpush3.bf16.msra.mxu1 %v246_v22 }
  0x1e   :  { %251 = vmatprep.subr.bf16.mxu0 %v250_v25  ;;  %261 = vmatprep.subr.bf16.mxu1 %v250_v25 }
  0x21   :  { %253 = vmatpush3.bf16.msra.mxu0 %v250_v25  ;;  %269 = vmatpush3.bf16.msra.mxu1 %v250_v25 }
  0x24   :  { %217 = vmatmul.mubr.f32.vlgmr.msra.gmra.mrb[0].mxu0 %v25_v26  ;;  %220 = vmatmul.mubr.f32.vlgmr.msra.gmra.mrb[0].mxu1 %v27_v27 }
  0xf7   :  { %v218_v28 = vpop.f32.mrb[0].mxu0  ;;  %v221_v29 = vpop.f32.mrb[0].mxu1 }
  0xf8   :  { %145 = vst [vmem:[#allocation3 + $0x8] sm:$0xff] %v218_v28  ;;  %147 = vst [vmem:[#allocation3 + $0x18] sm:$0xff] %v221_v29  ;;  %v110_v30 = vpop.f32.mrb[1].mxu0  ;;  %v120_v31 = vpop.f32.mrb[1].mxu1 }
  0xf9   :  { %144 = vst [vmem:[#allocation3] sm:$0xff] %v110_v30  ;;  %146 = vst [vmem:[#allocation3 + $0x10] sm:$0xff] %v120_v31 }
  0xfa   :  { %284 = shalt.err (!%p281_p4)
}
  0xfb   :  { %s285_s24 = scalar_lea.hbm %s389_s2, 512 }
  0xfc   :  { %p286_p5 = scmp.ne.s32.totalorder %s389_s2, %s285_s24  ;;  %p289_p6 = scmp.lt.u32.totalorder %s285_s24, %s389_s2 }
  0xfe   :  { %p291_p7 = pnand %p289_p6, %p286_p5 }
 0x100   :  { %294 = shalt.err (!%p291_p7)
}
 0x101   :  { %s298_s29 = smov 128   ;;  %s299_s30 = smov 8  }
 0x102   :  { %159 = dma.vmem_to_hbm [thread:$0]  %s154_s21, 512, %s389_s2, [#allocation4], %s298_s29, %s298_s29, %s299_s30  }
 0x103   :  { %295 = dma.done.wait [#allocation4], 512  }
 0x104   :  { %296 = vsyncadd [#allocation4], 4294966784 }
 0x105   :  { %163 = vsyncpa [#allocation4], 1 }

// kernel: _lambda_.6
= control target key start
LH: loop header
LB: loop body
LE: loop exit
PB: predicated region body
PF: predicated region fallthrough
CT: control target
= control target key end

     0   :  { %s1005_s15 = smov 0   ;;  %s1007_s16 = smov 0   ;;  %s1111_s0 = inlined_call_operand.vmem [shape: f32[2,16,128], index: 0, kind: input, shape index: {}]   ;;  %s1112_s1 = inlined_call_operand.vmem [shape: f32[2,8,256], index: 1, kind: input, shape index: {}]   ;;  %s1113_s2 = inlined_call_operand.vmem [shape: f32[1,64], index: 2, kind: input, shape index: {}]   ;;  %s1114_s3 = inlined_call_operand.vmem [shape: f32[1,64], index: 3, kind: input, shape index: {}]   ;;  %s1115_s4 = inlined_call_operand.vmem [shape: f32[2,16,128], index: 4, kind: output, shape index: {}]  }
   0x1   :  { %s1009_s17 = smov 0  }
   0x2 LB: > { %s26_s18 = sadd.s32 1, %s973_s16  ;;  %p846_p0 = scmp.ge.s32.totalorder %s977_s17, 1  ;;  %s977_s17 = sphi %s1009_s17, %s14_s17   ;;  %s973_s16 = sphi %s1007_s16, %s1117_s16   ;;  %s969_s15 = sphi %s1005_s15, %s1116_s15  }
   0x3   : > { %p28_p1 = scmp.ge.s32.totalorder %s26_s18, 2  ;;  %p193_p2 = scmp.lt.s32.totalorder %s977_s17, 3 }
   0x5   : > { %s1119_s18 = smov (%p28_p1, %s26_s18), 0  ;;  %p194_p3 = pnand %p846_p0, %p193_p2 }
   0x6   : > { %p233_p4 = scmp.lt.s32.totalorder (!%p194_p3), %s969_s15, 1  ;;  %vm264_vm0 = vcmask (!%p194_p3), 523264   ;;  %s979_s26 = smov (!%p194_p3), 64   ;;  %v854_v23 = vld [vmem:[%s1114_s3] ss:$0 sm:$0xff] (!%p194_p3)  ;;  %vm389_vm1 = vcmask (!%p194_p3), 64512  }
   0x7   : > { %197 = sbr.rel (%p194_p3) target bundleno = 1278 (0x4fe), region = 36  ;;  %v853_v28 = vld [vmem:[%s1113_s2] ss:$0 sm:$0xff] (!%p194_p3) }
   0xe   : > { %s1121_s15 = smov (!%p233_p4, %s969_s15), 1 }
   0xf   : > { %s1023_s19 = sshll.u32 %s1121_s15, 4 }
  0x10   : > { %s1029_s22 = scalar_lea.vmem %s1112_s1, %s1023_s19  ;;  %s240_s25 = scalar_lea.vmem %s1111_s0, %s1023_s19 }
  0x11   : > { %v1036_v0 = vld [vmem:[%s1029_s22] sm:$0xff]  ;;  %v1038_v2 = vld [vmem:[%s240_s25 + $0x8] sm:$0xff]  ;;  %s255_s7 = scalar_lea.vmem %s1115_s4, %s1023_s19 }
  0x12   : > { %v259_v1 = vld [vmem:[%s240_s25] sm:$0xff]  ;;  %v288_v3 = vmul.f32 %v1036_v0, %v1036_v0  ;;  %v263_v5 = vmul.f32 %v1038_v2, %v1038_v2  ;;  %v1065_v33 = vld [vmem:[%s1029_s22 + $0x8] sm:$0xff] }
  0x13   : > { %v262_v4 = vmul.f32 %v259_v1, %v259_v1  ;;  %v525_v34 = vmul.f32 %v1065_v33, %v1065_v33 }
  0x14   : > { %v289_v6 = vsel %vm264_vm0, %v288_v3, 0.0  ;;  %v268_v7 = vsel %vm264_vm0, %v263_v5, 0.0 }
  0x15   : > { %290 = vadd.xlane.f32.xlu0 %v289_v6  ;;  %269 = vadd.xlane.f32.xlu1 %v268_v7  ;;  %v265_v8 = vsel %vm264_vm0, %v262_v4, 0.0  ;;  %v526_v35 = vsel %vm264_vm0, %v525_v34, 0.0 }
  0x19   : > { %266 = vadd.xlane.f32.xlu0 %v265_v8 }
  0x26   : > { %500 = vrot.lane.b32.xlu1 %v262_v4, %s979_s26 }
  0x2f   : > { %502 = vrot.lane.b32.xlu0 %v263_v5, %s979_s26 }
  0xa2   : > { %v291_v9 = vpop.xlane.xlu0 %290  ;;  %v270_v10 = vpop.xlane.xlu1 %269 }
  0xa3   : > { %v292_v11 = vmul.f32 0.015625, %v291_v9  ;;  %v273_v12 = vmul.f32 0.015625, %v270_v10 }
  0xa5   : > { %v293_v13 = vadd.f32 1e-06, %v292_v11  ;;  %v275_v14 = vadd.f32 1e-06, %v273_v12 }
  0xa6   : > { %v267_v15 = vpop.xlane.xlu0 %266  ;;  %v501_v16 = vpop.permute.xlu1 %500 }
  0xa7   : > { %927 = vrsqrt.f32 %v293_v13  ;;  %v272_v17 = vmul.f32 0.015625, %v267_v15  ;;  %v506_v18 = vsel %vm264_vm0, %v501_v16, 0.0 }
  0xa8   : > { %929 = vrsqrt.f32 %v275_v14  ;;  %507 = vadd.xlane.f32.xlu1 %v506_v18 }
  0xa9   : > { %v274_v19 = vadd.f32 1e-06, %v272_v17 }
  0xaa   : > { %v503_v20 = vpop.permute.xlu0 %502 }
  0xab   : > { %931 = vrsqrt.f32 %v274_v19  ;;  %v509_v21 = vsel %vm264_vm0, %v503_v20, 0.0 }
  0xac   : > { %510 = vadd.xlane.f32.xlu0 %v509_v21 }
  0xb0   : > { %527 = vadd.xlane.f32.xlu0 %v526_v35 }
  0xb1   : > { %v928_v22 = vpop.eup %927 }
  0xb2   : > { %v930_v24 = vpop.eup %929  ;;  %v295_v25 = vmul.f32 %v928_v22, %v1036_v0 }
  0xb3   : > { %v279_v26 = vmul.f32 %v930_v24, %v1038_v2 }
  0xb4   : > { %v302_v27 = vmul.f32 %v854_v23, %v295_v25 }
  0xb5   : > { %v932_v29 = vpop.eup %931  ;;  %v287_v31 = vmul.f32 %v853_v28, %v279_v26 }
  0xb6   : > { %882 = vmatprep.subr.msk.mxu0 %vm264_vm0, %v302_v27  ;;  %v278_v30 = vmul.f32 %v932_v29, %v259_v1 }
  0xb7   : > { %883 = vmatpush3.xpose.msk.msra.mxu0 %vm264_vm0, %v302_v27 }
  0xb8   : > { %v286_v32 = vmul.f32 %v853_v28, %v278_v30 }
  0xb9   : > { %520 = vrot.lane.b32.xlu1 %v853_v28, %s979_s26 }
  0xba   : > { %884 = vmatprep.mubr.msk.f32.mxu0 %vm264_vm0, %v286_v32 }
  0xbb   : > { %885 = vmatmul.mubr.msk.f32.vlgmr.msra.gmra.mrb[0].mxu0 %vm264_vm0, %v287_v31 }
 0x135   : > { %v508_v36 = vpop.xlane.xlu1 %507 }
 0x136   : > { %v512_v37 = vmul.f32 0.015625, %v508_v36 }
 0x138   : > { %v514_v38 = vadd.f32 1e-06, %v512_v37 }
 0x139   : > { %v511_v39 = vpop.xlane.xlu0 %510  ;;  %v521_v43 = vpop.permute.xlu1 %520 }
 0x13a   : > { %933 = vrsqrt.f32 %v514_v38  ;;  %v513_v40 = vmul.f32 0.015625, %v511_v39 }
 0x13c   : > { %v515_v41 = vadd.f32 1e-06, %v513_v40 }
 0x13d   : > { %v528_v55 = vpop.xlane.xlu0 %527 }
 0x13e   : > { %935 = vrsqrt.f32 %v515_v41  ;;  %v529_v56 = vmul.f32 0.015625, %v528_v55 }
 0x140   : > { %v530_v57 = vadd.f32 1e-06, %v529_v56 }
 0x142   : > { %937 = vrsqrt.f32 %v530_v57 }
 0x144   : > { %v934_v42 = vpop.eup %933 }
 0x145   : > { %v518_v44 = vmul.f32 %v934_v42, %v259_v1 }
 0x147   : > { %v523_v45 = vmul.f32 %v521_v43, %v518_v44 }
 0x148   : > { %v936_v46 = vpop.eup %935 }
 0x149   : > { %v519_v47 = vmul.f32 %v936_v46, %v1038_v2  ;;  %536 = vrot.lane.b32.xlu1 %v523_v45, %s979_s26 }
 0x14b   : > { %v524_v48 = vmul.f32 %v521_v43, %v519_v47 }
 0x14c   : > { %v938_v58 = vpop.eup %937 }
 0x14d   : > { %538 = vrot.lane.b32.xlu1 %v524_v48, %s979_s26  ;;  %v532_v61 = vmul.f32 %v938_v58, %v1065_v33 }
 0x14f   : > { %v533_v3 = vmul.f32 %v854_v23, %v532_v61 }
 0x18e   : > { %v886_v49 = vpop.f32.mrb[0].mxu0 }
 0x18f   : > { %v388_v50 = vmul.f32 0.125, %v886_v49  ;;  %v378_v51 = vpop.f32.mrb[1].mxu0 }
 0x190   : > { %v387_v52 = vmul.f32 0.125, %v378_v51 }
 0x191   : > { %v393_v53 = vsel %vm389_vm1, %v388_v50, -inf }
 0x192   : > { %394 = vmax.xlane.f32.xlu0 %v393_v53  ;;  %v390_v54 = vsel %vm389_vm1, %v387_v52, -inf }
 0x196   : > { %391 = vmax.xlane.f32.xlu0 %v390_v54 }
 0x1ac   : > { %409 = vrot.lane.b32.xlu0 %v1036_v0, %s979_s26 }
 0x1bb   : > { %v537_v0 = vpop.permute.xlu1 %536 }
 0x1bf   : > { %v539_v7 = vpop.permute.xlu1 %538 }
 0x21f   : > { %v395_v59 = vpop.xlane.xlu0 %394 }
 0x220   : > { %v397_v60 = vsub.f32 %v388_v50, %v395_v59 }
 0x222   : > { %v400_v1 = vmul.f32 1.442695, %v397_v60 }
 0x223   : > { %v392_v62 = vpop.xlane.xlu0 %391 }
 0x224   : > { %v396_v63 = vsub.f32 %v387_v52, %v392_v62 }
 0x226   : > { %v398_v2 = vmul.f32 1.442695, %v396_v63 }
 0x227   : > { %v410_v4 = vpop.permute.xlu0 %409 }
 0x228   : > { %939 = vpow2.f32 %v398_v2  ;;  %887 = vmatprep.subr.mxu1 %v410_v4 }
 0x229   : > { %941 = vpow2.f32 %v400_v1  ;;  %888 = vmatpush3.msra.mxu1 %v410_v4 }
 0x22a   : > { %892 = vmatprep.subr.msk.mxu1 %vm264_vm0, %v533_v3 }
 0x232   : > { %v940_v5 = vpop.eup %939 }
 0x233   : > { %v942_v6 = vpop.eup %941  ;;  %889 = vmatprep.mubr.msk.f32.mxu1 %vm389_vm1, %v940_v5  ;;  %v402_v28 = vsel %vm389_vm1, %v940_v5, 0.0 }
 0x234   : > { %890 = vmatmul.mubr.msk.f32.vlgmr.msra.gmra.mrb[0].mxu1 %vm389_vm1, %v942_v6  ;;  %v405_v16 = vsel %vm389_vm1, %v942_v6, 0.0 }
 0x235   : > { %893 = vmatpush3.xpose.msk.msra.mxu1 %vm264_vm0, %v533_v3  ;;  %894 = vmatprep.mubr.msk.f32.mxu1 %vm264_vm0, %v537_v0 }
 0x238   : > { %895 = vmatmul.mubr.msk.f32.vlgmr.msra.gmra.mrb[2].mxu1 %vm264_vm0, %v539_v7 }
 0x307   : > { %v891_v8 = vpop.f32.mrb[0].mxu1 }
 0x308   : > { %v484_v9 = vpop.f32.mrb[1].mxu1 }
 0x30b   : > { %v896_v10 = vpop.f32.mrb[2].mxu1 }
 0x30c   : > { %v623_v11 = vmul.f32 0.125, %v896_v10  ;;  %v613_v12 = vpop.f32.mrb[3].mxu1 }
 0x30d   : > { %v622_v13 = vmul.f32 0.125, %v613_v12 }
 0x30e   : > { %v627_v14 = vsel %vm389_vm1, %v623_v11, -inf }
 0x30f   : > { %628 = vmax.xlane.f32.xlu0 %v627_v14  ;;  %v624_v15 = vsel %vm389_vm1, %v622_v13, -inf }
 0x310   : > { %625 = vmax.xlane.f32.xlu1 %v624_v15 }
 0x321   : > { %643 = vrot.lane.b32.xlu1 %v1065_v33, %s979_s26 }
 0x345   : > { %406 = vadd.xlane.f32.xlu1 %v405_v16 }
 0x39c   : > { %v629_v17 = vpop.xlane.xlu0 %628 }
 0x39d   : > { %v631_v18 = vsub.f32 %v623_v11, %v629_v17  ;;  %v626_v19 = vpop.xlane.xlu1 %625 }
 0x39e   : > { %v630_v20 = vsub.f32 %v622_v13, %v626_v19 }
 0x39f   : > { %v634_v21 = vmul.f32 1.442695, %v631_v18 }
 0x3a0   : > { %v632_v22 = vmul.f32 1.442695, %v630_v20 }
 0x3a1   : > { %v644_v23 = vpop.permute.xlu1 %643 }
 0x3a2   : > { %943 = vpow2.f32 %v632_v22  ;;  %897 = vmatprep.subr.mxu0 %v644_v23 }
 0x3a3   : > { %945 = vpow2.f32 %v634_v21  ;;  %898 = vmatpush3.msra.mxu0 %v644_v23 }
 0x3ac   : > { %v944_v24 = vpop.eup %943 }
 0x3ad   : > { %v946_v25 = vpop.eup %945  ;;  %899 = vmatprep.mubr.msk.f32.mxu0 %vm389_vm1, %v944_v24  ;;  %v636_v26 = vsel %vm389_vm1, %v944_v24, 0.0 }
 0x3ae   : > { %637 = vadd.xlane.f32.xlu0 %v636_v26  ;;  %900 = vmatmul.mubr.msk.f32.vlgmr.msra.gmra.mrb[2].mxu0 %vm389_vm1, %v946_v25  ;;  %v639_v27 = vsel %vm389_vm1, %v946_v25, 0.0 }
 0x3b2   : > { %640 = vadd.xlane.f32.xlu0 %v639_v27 }
 0x3b6   : > { %403 = vadd.xlane.f32.xlu0 %v402_v28 }
 0x3d2   : > { %v407_v38 = vpop.xlane.xlu1 %406 }
 0x43b   : > { %v638_v29 = vpop.xlane.xlu0 %637 }
 0x43c   : > { %947 = vrcp.f32 %v638_v29 }
 0x43f   : > { %v641_v30 = vpop.xlane.xlu0 %640 }
 0x440   : > { %949 = vrcp.f32 %v641_v30 }
 0x443   : > { %v404_v37 = vpop.xlane.xlu0 %403 }
 0x444   : > { %951 = vrcp.f32 %v404_v37 }
 0x445   : > { %953 = vrcp.f32 %v407_v38 }
 0x446   : > { %v948_v32 = vpop.eup %947 }
 0x44a   : > { %v950_v35 = vpop.eup %949 }
 0x44e   : > { %v952_v39 = vpop.eup %951 }
 0x44f   : > { %v495_v40 = vmul.f32 %v952_v39, %v484_v9  ;;  %v954_v41 = vpop.eup %953 }
 0x450   : > { %v496_v44 = vmul.f32 %v954_v41, %v891_v8 }
 0x481   : > { %v901_v31 = vpop.f32.mrb[2].mxu0 }
 0x482   : > { %v718_v33 = vpop.f32.mrb[3].mxu0  ;;  %v730_v36 = vmul.f32 %v950_v35, %v901_v31 }
 0x483   : > { %v729_v34 = vmul.f32 %v948_v32, %v718_v33 }
 0x485   : > { %733 = vrot.lane.b32.xlu0 %v729_v34, %s979_s26 }
 0x489   : > { %735 = vrot.lane.b32.xlu0 %v730_v36, %s979_s26 }
 0x4f7   : > { %v734_v42 = vpop.permute.xlu0 %733 }
 0x4f8   : > { %v739_v43 = vsel %vm264_vm0, %v495_v40, %v734_v42 }
 0x4f9   : > { %741 = vst [vmem:[%s255_s7] sm:$0xff] %v739_v43 }
 0x4fb   : > { %v736_v45 = vpop.permute.xlu0 %735 }
 0x4fc   : > { %v740_v46 = vsel %vm264_vm0, %v496_v44, %v736_v45 }
 0x4fd   : > { %742 = vst [vmem:[%s255_s7 + $0x8] sm:$0xff] %v740_v46 }
 0x4fe PF: > { %s14_s17 = sadd.s32 1, %s977_s17   ;;  %s1116_s15 = smov %s973_s16 }
 0x4ff   : > { %p11_p5 = scmp.ge.s32.totalorder %s14_s17, 4   ;;  %s1117_s16 = smov %s1119_s18 }
 0x501   :  { %13 = sbr.rel (!%p11_p5) target bundleno = 2 (0x2), region = 69 }

</bundles_post_ra>
